<compile_context>
chip_gen: v7x
topology: tpu7x:2x2x1
jax: 0.10.0
libtpu: 0.0.40
codegen_flags: <defaults>
</compile_context>

<pallas_src>
import functools

import jax
import jax.numpy as jnp
from jax.experimental import pallas as pl
from jax.experimental.pallas import tpu as pltpu


def _flow_kernel(xc_ref, w1_ref, b1_ref, w2s_ref, w2f_ref, b2s_ref, b2f_ref,
                 out_ref, *, num_layers, hidden):
    xc = xc_ref[...]                                   # (TB, 1+D); col 0 = x

    # Fused conditioner first layer for ALL flow layers: one MXU matmul.
    h = jnp.dot(xc, w1_ref[...], preferred_element_type=jnp.float32)
    h = jnp.maximum(h + b1_ref[...], 0.0)              # (TB, L*H)

    # Second linear (H -> 2) per layer on VPU + XLU (no N=2 MXU pass):
    # broadcast-multiply once, then per-layer lane reductions.
    ps = h * w2s_ref[...]                              # (TB, L*H) scale terms
    pf = h * w2f_ref[...]                              # (TB, L*H) shift terms
    b2s = b2s_ref[...]                                 # (1, L)
    b2f = b2f_ref[...]                                 # (1, L)

    x = xc[:, 0:1]                                     # (TB, 1) flow state
    logdet = jnp.zeros_like(x)
    for l in range(num_layers):                        # static unroll, small L
        lo, hi = l * hidden, (l + 1) * hidden
        raw = jnp.sum(ps[:, lo:hi], axis=-1, keepdims=True) + b2s[:, l:l + 1]
        sft = jnp.sum(pf[:, lo:hi], axis=-1, keepdims=True) + b2f[:, l:l + 1]
        scale = jax.nn.softplus(raw) + 1e-3            # strictly positive
        x = scale * x + sft
        logdet = logdet + jnp.log(scale)               # log|det| of the layer

    # Merged lane-wise output: column 0 = transformed x, column 1 = logabsdet.
    out_ref[:, 0:1] = x
    out_ref[:, 1:2] = logdet


def _pick_tile_b(batch, cap=512):
    """Largest batch tile <= cap that divides `batch` (multiple of 8), else full batch."""
    if batch <= cap:
        return batch
    for t in range(cap, 0, -8):
        if batch % t == 0:
            return t
    return batch


def normalizing_flow_forward(inputs, context, masks, w1, b1, w2, b2):
    """inputs (B,1), context (B,D), masks (L,D), w1 (L,D,H), b1 (L,H),
    w2 (L,H,2), b2 (L,2)  ->  (outputs (B,1), logabsdet (B,1))."""
    B, D = context.shape
    L, _, H = w1.shape

    # ---- one-time weight preparation (plain JAX; cacheable per flow) -------
    # Fold each layer's parent mask into its first linear:
    #   (ctx * mask_l) @ W1_l == ctx @ (mask_l[:, None] * W1_l)
    w1_masked = w1 * masks[:, :, None]                               # (L, D, H)
    w1_fused = jnp.transpose(w1_masked, (1, 0, 2)).reshape(D, L * H)
    # Row 0 corresponds to the fused `inputs` column; it must not feed the MLP.
    w1_aug = jnp.concatenate(
        [jnp.zeros((1, L * H), w1.dtype), w1_fused], axis=0)         # (1+D, L*H)
    b1_fused = b1.reshape(1, L * H)
    w2_scale = w2[:, :, 0].reshape(1, L * H)
    w2_shift = w2[:, :, 1].reshape(1, L * H)
    b2_scale = b2[:, 0].reshape(1, L)
    b2_shift = b2[:, 1].reshape(1, L)

    # Single streamed activation slab: col 0 = inputs, cols 1..D = context.
    xc = jnp.concatenate([inputs, context], axis=1)                  # (B, 1+D)

    tile_b = _pick_tile_b(B)
    grid = (B // tile_b,)

    act_spec = pl.BlockSpec((tile_b, 1 + D), lambda i: (i, 0))
    out_spec = pl.BlockSpec((tile_b, 2), lambda i: (i, 0))
    resident = lambda shape: pl.BlockSpec(shape, lambda i: (0, 0))   # weights stay in VMEM

    merged = pl.pallas_call(
        functools.partial(_flow_kernel, num_layers=L, hidden=H),
        out_shape=jax.ShapeDtypeStruct((B, 2), jnp.float32),
        grid=grid,
        in_specs=[
            act_spec,                      # (B, 1+D) activations (batch-tiled)
            resident((1 + D, L * H)),      # fused, masked W1 (+ zero x-row)
            resident((1, L * H)),          # fused b1
            resident((1, L * H)),          # W2[:, :, 0]  (scale weights)
            resident((1, L * H)),          # W2[:, :, 1]  (shift weights)
            resident((1, L)),              # b2[:, 0]
            resident((1, L)),              # b2[:, 1]
        ],
        out_specs=out_spec,
        compiler_params=pltpu.CompilerParams(
            dimension_semantics=("parallel",)),   # megacore sharding on v7x
    )(xc, w1_aug, b1_fused, w2_scale, w2_shift, b2_scale, b2_shift)

    return merged[:, 0:1], merged[:, 1:2]


def _reference(inputs, context, masks, w1, b1, w2, b2):
    x = inputs
    logabsdet = jnp.zeros((inputs.shape[0], 1), dtype=jnp.float32)
    for l in range(w1.shape[0]):
        masked_ctx = context * masks[l][None, :]
        h = jnp.maximum(masked_ctx @ w1[l] + b1[l][None, :], 0.0)
        params = h @ w2[l] + b2[l][None, :]
        scale = jax.nn.softplus(params[:, 0:1]) + 1e-3
        shift = params[:, 1:2]
        x = scale * x + shift
        logabsdet = logabsdet + jnp.log(scale)
    return x, logabsdet


if __name__ == "__main__":
    B, D, H, L = 8, 8, 32, 4     # batch, dim_z, MLP hidden, number of flow layers

    key = jax.random.PRNGKey(0)
    k_x, k_c, k_w1, k_b1, k_w2, k_b2 = jax.random.split(key, 6)

    inputs = jax.random.normal(k_x, (B, 1), dtype=jnp.float32)
    context = jax.random.normal(k_c, (B, D), dtype=jnp.float32)

    # Fixed lower-triangular DAG: flow layer l is the solution transform of
    # SCM component l; its parents are {0, ..., l-1}; its own entry is masked.
    masks = (jnp.arange(D)[None, :] < jnp.arange(L)[:, None]).astype(jnp.float32)

    # Deterministic synthetic conditioner parameters for each flow layer.
    w1 = jax.random.normal(k_w1, (L, D, H), dtype=jnp.float32) * 0.1
    b1 = jax.random.normal(k_b1, (L, H), dtype=jnp.float32) * 0.1
    w2 = jax.random.normal(k_w2, (L, H, 2), dtype=jnp.float32) * 0.1
    b2 = jax.random.normal(k_b2, (L, 2), dtype=jnp.float32) * 0.1

    out, logabsdet = normalizing_flow_forward(inputs, context, masks, w1, b1, w2, b2)
    jax.block_until_ready((out, logabsdet))

    ref_out, ref_ld = _reference(inputs, context, masks, w1, b1, w2, b2)
    assert out.shape == (B, 1) and logabsdet.shape == (B, 1)
    assert jnp.allclose(out, ref_out, atol=1e-5, rtol=1e-5)
    assert jnp.allclose(logabsdet, ref_ld, atol=1e-5, rtol=1e-5)

    # TODO(synk): NormalizingFlow.inverse() and compute_regularization_term()
    # are not part of the forward pass and are not implemented here.
    print("KERNEL_OK")
</pallas_src>

<mosaic_0001>
module attributes {stable_mosaic.version = 11 : i64} {
  func.func @_flow_kernel(%arg0: i32, %arg1: memref<8x9xf32, #tpu.memory_space<vmem>>, %arg2: memref<9x128xf32, #tpu.memory_space<vmem>>, %arg3: memref<1x128xf32, #tpu.memory_space<vmem>>, %arg4: memref<1x128xf32, #tpu.memory_space<vmem>>, %arg5: memref<1x128xf32, #tpu.memory_space<vmem>>, %arg6: memref<1x4xf32, #tpu.memory_space<vmem>>, %arg7: memref<1x4xf32, #tpu.memory_space<vmem>>, %arg8: memref<8x2xf32, #tpu.memory_space<vmem>>) attributes {dimension_semantics = [#tpu.dimension_semantics<parallel>], iteration_bounds = array<i64: 1>, scalar_prefetch = 0 : i64, scratch_operands = 0 : i64, tpu.core_type = #tpu.core_type<tc>, window_params = [{transform_indices = @transform_0, window_bounds = array<i64: 8, 9>}, {pipeline_mode = #tpu.pipeline_mode<synchronous>, transform_indices = @transform_1, window_bounds = array<i64: 9, 128>}, {pipeline_mode = #tpu.pipeline_mode<synchronous>, transform_indices = @transform_2, window_bounds = array<i64: 1, 128>}, {pipeline_mode = #tpu.pipeline_mode<synchronous>, transform_indices = @transform_3, window_bounds = array<i64: 1, 128>}, {pipeline_mode = #tpu.pipeline_mode<synchronous>, transform_indices = @transform_4, window_bounds = array<i64: 1, 128>}, {pipeline_mode = #tpu.pipeline_mode<synchronous>, transform_indices = @transform_5, window_bounds = array<i64: 1, 4>}, {pipeline_mode = #tpu.pipeline_mode<synchronous>, transform_indices = @transform_6, window_bounds = array<i64: 1, 4>}, {transform_indices = @transform_7, window_bounds = array<i64: 8, 2>}]} {
    %c0 = arith.constant 0 : index
    %c0_0 = arith.constant 0 : index
    %0 = vector.load %arg1[%c0, %c0_0] : memref<8x9xf32, #tpu.memory_space<vmem>>, vector<8x9xf32>
    %c0_1 = arith.constant 0 : index
    %c0_2 = arith.constant 0 : index
    %1 = vector.load %arg2[%c0_1, %c0_2] : memref<9x128xf32, #tpu.memory_space<vmem>>, vector<9x128xf32>
    %cst = arith.constant dense<0.000000e+00> : vector<8x128xf32>
    %2 = tpu.matmul %0, %1, %cst {dimension_numbers = #tpu.dot_dimension_numbers<[1], [0], [0], [1], [0, 0, 1, 1], [], []>} : vector<8x9xf32>, vector<9x128xf32>, vector<8x128xf32> -> vector<8x128xf32>
    %c0_3 = arith.constant 0 : index
    %c0_4 = arith.constant 0 : index
    %3 = vector.load %arg3[%c0_3, %c0_4] : memref<1x128xf32, #tpu.memory_space<vmem>>, vector<1x128xf32>
    %4 = vector.broadcast %3 : vector<1x128xf32> to vector<8x128xf32>
    %5 = arith.addf %2, %4 : vector<8x128xf32>
    %cst_5 = arith.constant 0.000000e+00 : f32
    %6 = vector.broadcast %cst_5 : f32 to vector<8x128xf32>
    %7 = arith.maximumf %5, %6 : vector<8x128xf32>
    %c0_6 = arith.constant 0 : index
    %c0_7 = arith.constant 0 : index
    %8 = vector.load %arg4[%c0_6, %c0_7] : memref<1x128xf32, #tpu.memory_space<vmem>>, vector<1x128xf32>
    %9 = vector.broadcast %8 : vector<1x128xf32> to vector<8x128xf32>
    %10 = arith.mulf %7, %9 : vector<8x128xf32>
    %c0_8 = arith.constant 0 : index
    %c0_9 = arith.constant 0 : index
    %11 = vector.load %arg5[%c0_8, %c0_9] : memref<1x128xf32, #tpu.memory_space<vmem>>, vector<1x128xf32>
    %12 = vector.broadcast %11 : vector<1x128xf32> to vector<8x128xf32>
    %13 = arith.mulf %7, %12 : vector<8x128xf32>
    %c0_10 = arith.constant 0 : index
    %c0_11 = arith.constant 0 : index
    %14 = vector.load %arg6[%c0_10, %c0_11] : memref<1x4xf32, #tpu.memory_space<vmem>>, vector<1x4xf32>
    %c0_12 = arith.constant 0 : index
    %c0_13 = arith.constant 0 : index
    %15 = vector.load %arg7[%c0_12, %c0_13] : memref<1x4xf32, #tpu.memory_space<vmem>>, vector<1x4xf32>
    %16 = vector.extract_strided_slice %0 {offsets = [0, 0], sizes = [8, 1], strides = [1, 1]} : vector<8x9xf32> to vector<8x1xf32>
    %cst_14 = arith.constant 0.000000e+00 : f32
    %17 = vector.broadcast %cst_14 : f32 to vector<8x1xf32>
    %18 = vector.extract_strided_slice %10 {offsets = [0, 0], sizes = [8, 32], strides = [1, 1]} : vector<8x128xf32> to vector<8x32xf32>
    %cst_15 = arith.constant dense<0.000000e+00> : vector<8xf32>
    %19 = vector.multi_reduction <add>, %18, %cst_15 [1] : vector<8x32xf32> to vector<8xf32>
    %20 = vector.shape_cast %19 : vector<8xf32> to vector<8x1xf32>
    %21 = vector.extract_strided_slice %14 {offsets = [0, 0], sizes = [1, 1], strides = [1, 1]} : vector<1x4xf32> to vector<1x1xf32>
    %22 = vector.broadcast %21 : vector<1x1xf32> to vector<8x1xf32>
    %23 = arith.addf %20, %22 : vector<8x1xf32>
    %24 = vector.extract_strided_slice %13 {offsets = [0, 0], sizes = [8, 32], strides = [1, 1]} : vector<8x128xf32> to vector<8x32xf32>
    %cst_16 = arith.constant dense<0.000000e+00> : vector<8xf32>
    %25 = vector.multi_reduction <add>, %24, %cst_16 [1] : vector<8x32xf32> to vector<8xf32>
    %26 = vector.shape_cast %25 : vector<8xf32> to vector<8x1xf32>
    %27 = vector.extract_strided_slice %15 {offsets = [0, 0], sizes = [1, 1], strides = [1, 1]} : vector<1x4xf32> to vector<1x1xf32>
    %28 = vector.broadcast %27 : vector<1x1xf32> to vector<8x1xf32>
    %29 = arith.addf %26, %28 : vector<8x1xf32>
    %cst_17 = arith.constant 0.000000e+00 : f32
    %30 = vector.broadcast %cst_17 : f32 to vector<8x1xf32>
    %31 = arith.maximumf %23, %30 : vector<8x1xf32>
    %32 = vector.broadcast %cst_17 : f32 to vector<8x1xf32>
    %33 = arith.subf %23, %32 : vector<8x1xf32>
    %34 = arith.cmpf one, %33, %33 : vector<8x1xf32>
    %35 = vector.broadcast %cst_17 : f32 to vector<8x1xf32>
    %36 = arith.addf %23, %35 : vector<8x1xf32>
    %37 = math.absf %33 : vector<8x1xf32>
    %cst_18 = arith.constant 0.000000e+00 : f32
    %38 = vector.broadcast %cst_18 : f32 to vector<8x1xf32>
    %39 = arith.subf %38, %37 : vector<8x1xf32>
    %40 = math.exp %39 : vector<8x1xf32>
    %41 = math.log1p %40 : vector<8x1xf32>
    %42 = arith.addf %31, %41 : vector<8x1xf32>
    %43 = arith.select %34, %36, %42 : vector<8x1xi1>, vector<8x1xf32>
    %cst_19 = arith.constant 1.000000e-03 : f32
    %44 = vector.broadcast %cst_19 : f32 to vector<8x1xf32>
    %45 = arith.addf %43, %44 : vector<8x1xf32>
    %46 = arith.mulf %45, %16 : vector<8x1xf32>
    %47 = arith.addf %46, %29 : vector<8x1xf32>
    %48 = math.log %45 : vector<8x1xf32>
    %49 = arith.addf %17, %48 : vector<8x1xf32>
    %50 = vector.extract_strided_slice %10 {offsets = [0, 32], sizes = [8, 32], strides = [1, 1]} : vector<8x128xf32> to vector<8x32xf32>
    %cst_20 = arith.constant dense<0.000000e+00> : vector<8xf32>
    %51 = vector.multi_reduction <add>, %50, %cst_20 [1] : vector<8x32xf32> to vector<8xf32>
    %52 = vector.shape_cast %51 : vector<8xf32> to vector<8x1xf32>
    %53 = vector.extract_strided_slice %14 {offsets = [0, 1], sizes = [1, 1], strides = [1, 1]} : vector<1x4xf32> to vector<1x1xf32>
    %54 = vector.broadcast %53 : vector<1x1xf32> to vector<8x1xf32>
    %55 = arith.addf %52, %54 : vector<8x1xf32>
    %56 = vector.extract_strided_slice %13 {offsets = [0, 32], sizes = [8, 32], strides = [1, 1]} : vector<8x128xf32> to vector<8x32xf32>
    %cst_21 = arith.constant dense<0.000000e+00> : vector<8xf32>
    %57 = vector.multi_reduction <add>, %56, %cst_21 [1] : vector<8x32xf32> to vector<8xf32>
    %58 = vector.shape_cast %57 : vector<8xf32> to vector<8x1xf32>
    %59 = vector.extract_strided_slice %15 {offsets = [0, 1], sizes = [1, 1], strides = [1, 1]} : vector<1x4xf32> to vector<1x1xf32>
    %60 = vector.broadcast %59 : vector<1x1xf32> to vector<8x1xf32>
    %61 = arith.addf %58, %60 : vector<8x1xf32>
    %cst_22 = arith.constant 0.000000e+00 : f32
    %62 = vector.broadcast %cst_22 : f32 to vector<8x1xf32>
    %63 = arith.maximumf %55, %62 : vector<8x1xf32>
    %64 = vector.broadcast %cst_22 : f32 to vector<8x1xf32>
    %65 = arith.subf %55, %64 : vector<8x1xf32>
    %66 = arith.cmpf one, %65, %65 : vector<8x1xf32>
    %67 = vector.broadcast %cst_22 : f32 to vector<8x1xf32>
    %68 = arith.addf %55, %67 : vector<8x1xf32>
    %69 = math.absf %65 : vector<8x1xf32>
    %cst_23 = arith.constant 0.000000e+00 : f32
    %70 = vector.broadcast %cst_23 : f32 to vector<8x1xf32>
    %71 = arith.subf %70, %69 : vector<8x1xf32>
    %72 = math.exp %71 : vector<8x1xf32>
    %73 = math.log1p %72 : vector<8x1xf32>
    %74 = arith.addf %63, %73 : vector<8x1xf32>
    %75 = arith.select %66, %68, %74 : vector<8x1xi1>, vector<8x1xf32>
    %cst_24 = arith.constant 1.000000e-03 : f32
    %76 = vector.broadcast %cst_24 : f32 to vector<8x1xf32>
    %77 = arith.addf %75, %76 : vector<8x1xf32>
    %78 = arith.mulf %77, %47 : vector<8x1xf32>
    %79 = arith.addf %78, %61 : vector<8x1xf32>
    %80 = math.log %77 : vector<8x1xf32>
    %81 = arith.addf %49, %80 : vector<8x1xf32>
    %82 = vector.extract_strided_slice %10 {offsets = [0, 64], sizes = [8, 32], strides = [1, 1]} : vector<8x128xf32> to vector<8x32xf32>
    %cst_25 = arith.constant dense<0.000000e+00> : vector<8xf32>
    %83 = vector.multi_reduction <add>, %82, %cst_25 [1] : vector<8x32xf32> to vector<8xf32>
    %84 = vector.shape_cast %83 : vector<8xf32> to vector<8x1xf32>
    %85 = vector.extract_strided_slice %14 {offsets = [0, 2], sizes = [1, 1], strides = [1, 1]} : vector<1x4xf32> to vector<1x1xf32>
    %86 = vector.broadcast %85 : vector<1x1xf32> to vector<8x1xf32>
    %87 = arith.addf %84, %86 : vector<8x1xf32>
    %88 = vector.extract_strided_slice %13 {offsets = [0, 64], sizes = [8, 32], strides = [1, 1]} : vector<8x128xf32> to vector<8x32xf32>
    %cst_26 = arith.constant dense<0.000000e+00> : vector<8xf32>
    %89 = vector.multi_reduction <add>, %88, %cst_26 [1] : vector<8x32xf32> to vector<8xf32>
    %90 = vector.shape_cast %89 : vector<8xf32> to vector<8x1xf32>
    %91 = vector.extract_strided_slice %15 {offsets = [0, 2], sizes = [1, 1], strides = [1, 1]} : vector<1x4xf32> to vector<1x1xf32>
    %92 = vector.broadcast %91 : vector<1x1xf32> to vector<8x1xf32>
    %93 = arith.addf %90, %92 : vector<8x1xf32>
    %cst_27 = arith.constant 0.000000e+00 : f32
    %94 = vector.broadcast %cst_27 : f32 to vector<8x1xf32>
    %95 = arith.maximumf %87, %94 : vector<8x1xf32>
    %96 = vector.broadcast %cst_27 : f32 to vector<8x1xf32>
    %97 = arith.subf %87, %96 : vector<8x1xf32>
    %98 = arith.cmpf one, %97, %97 : vector<8x1xf32>
    %99 = vector.broadcast %cst_27 : f32 to vector<8x1xf32>
    %100 = arith.addf %87, %99 : vector<8x1xf32>
    %101 = math.absf %97 : vector<8x1xf32>
    %cst_28 = arith.constant 0.000000e+00 : f32
    %102 = vector.broadcast %cst_28 : f32 to vector<8x1xf32>
    %103 = arith.subf %102, %101 : vector<8x1xf32>
    %104 = math.exp %103 : vector<8x1xf32>
    %105 = math.log1p %104 : vector<8x1xf32>
    %106 = arith.addf %95, %105 : vector<8x1xf32>
    %107 = arith.select %98, %100, %106 : vector<8x1xi1>, vector<8x1xf32>
    %cst_29 = arith.constant 1.000000e-03 : f32
    %108 = vector.broadcast %cst_29 : f32 to vector<8x1xf32>
    %109 = arith.addf %107, %108 : vector<8x1xf32>
    %110 = arith.mulf %109, %79 : vector<8x1xf32>
    %111 = arith.addf %110, %93 : vector<8x1xf32>
    %112 = math.log %109 : vector<8x1xf32>
    %113 = arith.addf %81, %112 : vector<8x1xf32>
    %114 = vector.extract_strided_slice %10 {offsets = [0, 96], sizes = [8, 32], strides = [1, 1]} : vector<8x128xf32> to vector<8x32xf32>
    %cst_30 = arith.constant dense<0.000000e+00> : vector<8xf32>
    %115 = vector.multi_reduction <add>, %114, %cst_30 [1] : vector<8x32xf32> to vector<8xf32>
    %116 = vector.shape_cast %115 : vector<8xf32> to vector<8x1xf32>
    %117 = vector.extract_strided_slice %14 {offsets = [0, 3], sizes = [1, 1], strides = [1, 1]} : vector<1x4xf32> to vector<1x1xf32>
    %118 = vector.broadcast %117 : vector<1x1xf32> to vector<8x1xf32>
    %119 = arith.addf %116, %118 : vector<8x1xf32>
    %120 = vector.extract_strided_slice %13 {offsets = [0, 96], sizes = [8, 32], strides = [1, 1]} : vector<8x128xf32> to vector<8x32xf32>
    %cst_31 = arith.constant dense<0.000000e+00> : vector<8xf32>
    %121 = vector.multi_reduction <add>, %120, %cst_31 [1] : vector<8x32xf32> to vector<8xf32>
    %122 = vector.shape_cast %121 : vector<8xf32> to vector<8x1xf32>
    %123 = vector.extract_strided_slice %15 {offsets = [0, 3], sizes = [1, 1], strides = [1, 1]} : vector<1x4xf32> to vector<1x1xf32>
    %124 = vector.broadcast %123 : vector<1x1xf32> to vector<8x1xf32>
    %125 = arith.addf %122, %124 : vector<8x1xf32>
    %cst_32 = arith.constant 0.000000e+00 : f32
    %126 = vector.broadcast %cst_32 : f32 to vector<8x1xf32>
    %127 = arith.maximumf %119, %126 : vector<8x1xf32>
    %128 = vector.broadcast %cst_32 : f32 to vector<8x1xf32>
    %129 = arith.subf %119, %128 : vector<8x1xf32>
    %130 = arith.cmpf one, %129, %129 : vector<8x1xf32>
    %131 = vector.broadcast %cst_32 : f32 to vector<8x1xf32>
    %132 = arith.addf %119, %131 : vector<8x1xf32>
    %133 = math.absf %129 : vector<8x1xf32>
    %cst_33 = arith.constant 0.000000e+00 : f32
    %134 = vector.broadcast %cst_33 : f32 to vector<8x1xf32>
    %135 = arith.subf %134, %133 : vector<8x1xf32>
    %136 = math.exp %135 : vector<8x1xf32>
    %137 = math.log1p %136 : vector<8x1xf32>
    %138 = arith.addf %127, %137 : vector<8x1xf32>
    %139 = arith.select %130, %132, %138 : vector<8x1xi1>, vector<8x1xf32>
    %cst_34 = arith.constant 1.000000e-03 : f32
    %140 = vector.broadcast %cst_34 : f32 to vector<8x1xf32>
    %141 = arith.addf %139, %140 : vector<8x1xf32>
    %142 = arith.mulf %141, %111 : vector<8x1xf32>
    %143 = arith.addf %142, %125 : vector<8x1xf32>
    %144 = math.log %141 : vector<8x1xf32>
    %145 = arith.addf %113, %144 : vector<8x1xf32>
    %c0_35 = arith.constant 0 : index
    %c0_36 = arith.constant 0 : index
    %146 = vector.load %arg8[%c0_35, %c0_36] : memref<8x2xf32, #tpu.memory_space<vmem>>, vector<8x1xf32>
    tpu.vector_store %arg8[%c0_35, %c0_36], %143 {strides = array<i32>} : memref<8x2xf32, #tpu.memory_space<vmem>>, vector<8x1xf32>,
    %c0_37 = arith.constant 0 : index
    %c1 = arith.constant 1 : index
    %147 = vector.load %arg8[%c0_37, %c1] : memref<8x2xf32, #tpu.memory_space<vmem>>, vector<8x1xf32>
    tpu.vector_store %arg8[%c0_37, %c1], %145 {strides = array<i32>} : memref<8x2xf32, #tpu.memory_space<vmem>>, vector<8x1xf32>,
    return
  }
  func.func @transform_0(%arg0: i32) -> (i32, i32) {
    %c0_i32 = arith.constant 0 : i32
    %c0_i32_0 = arith.constant 0 : i32
    return %arg0, %c0_i32 : i32, i32
  }
  func.func @transform_1(%arg0: i32) -> (i32, i32) {
    %c0_i32 = arith.constant 0 : i32
    %c0_i32_0 = arith.constant 0 : i32
    %c0_i32_1 = arith.constant 0 : i32
    return %c0_i32, %c0_i32_0 : i32, i32
  }
  func.func @transform_2(%arg0: i32) -> (i32, i32) {
    %c0_i32 = arith.constant 0 : i32
    %c0_i32_0 = arith.constant 0 : i32
    %c0_i32_1 = arith.constant 0 : i32
    return %c0_i32, %c0_i32_0 : i32, i32
  }
  func.func @transform_3(%arg0: i32) -> (i32, i32) {
    %c0_i32 = arith.constant 0 : i32
    %c0_i32_0 = arith.constant 0 : i32
    %c0_i32_1 = arith.constant 0 : i32
    return %c0_i32, %c0_i32_0 : i32, i32
  }
  func.func @transform_4(%arg0: i32) -> (i32, i32) {
    %c0_i32 = arith.constant 0 : i32
    %c0_i32_0 = arith.constant 0 : i32
    %c0_i32_1 = arith.constant 0 : i32
    return %c0_i32, %c0_i32_0 : i32, i32
  }
  func.func @transform_5(%arg0: i32) -> (i32, i32) {
    %c0_i32 = arith.constant 0 : i32
    %c0_i32_0 = arith.constant 0 : i32
    %c0_i32_1 = arith.constant 0 : i32
    return %c0_i32, %c0_i32_0 : i32, i32
  }
  func.func @transform_6(%arg0: i32) -> (i32, i32) {
    %c0_i32 = arith.constant 0 : i32
    %c0_i32_0 = arith.constant 0 : i32
    %c0_i32_1 = arith.constant 0 : i32
    return %c0_i32, %c0_i32_0 : i32, i32
  }
  func.func @transform_7(%arg0: i32) -> (i32, i32) {
    %c0_i32 = arith.constant 0 : i32
    %c0_i32_0 = arith.constant 0 : i32
    return %arg0, %c0_i32 : i32, i32
  }
}

</mosaic_0001>

<bundles_post_ra>
// kernel: tpu_custom_call.1
= control target key start
LH: loop header
LB: loop body
LE: loop exit
PB: predicated region body
PF: predicated region fallthrough
CT: control target
= control target key end

     0   :  { %12 = vsyncpa [#allocation3], 0  ;;  %s613_s0 = inlined_call_operand.hbm [shape: f32[8,9], index: 0, kind: input, shape index: {}]   ;;  %s614_s1 = inlined_call_operand.hbm [shape: f32[9,128], index: 1, kind: input, shape index: {}]   ;;  %s615_s2 = inlined_call_operand.vmem [shape: f32[1,128], index: 2, kind: input, shape index: {}]   ;;  %s616_s3 = inlined_call_operand.vmem [shape: f32[1,128], index: 3, kind: input, shape index: {}]   ;;  %s617_s4 = inlined_call_operand.vmem [shape: f32[1,128], index: 4, kind: input, shape index: {}]   ;;  %s618_s5 = inlined_call_operand.vmem [shape: f32[1,4], index: 5, kind: input, shape index: {}]   ;;  %s619_s6 = inlined_call_operand.vmem [shape: f32[1,4], index: 6, kind: input, shape index: {}]   ;;  %s620_s7 = inlined_call_operand.vmem [shape: f32[8,2], index: 7, kind: output, shape index: {}]  }
   0x1   :  { %13 = vsyncpa [#allocation5], 0  ;;  %s470_s24 = smov [#allocation2]   ;;  %s471_s26 = smov [#allocation4]  }
   0x2   :  { %s20_s25 = sshll.u32 %s470_s24, 4  ;;  %s29_s27 = sshll.u32 %s471_s26, 4  ;;  %s21_s25 = int_to_ptr.vmem [resolvable:$true] %s20_s25  ;;  %s525_s27 = int_to_ptr.vmem [resolvable:$true] %s29_s27 }
   0x3   :  { %s422_s30 = scalar_lea.hbm %s613_s0, 128 }
   0x4   :  { %p423_p0 = scmp.ne.s32.totalorder %s613_s0, %s422_s30  ;;  %p426_p1 = scmp.lt.u32.totalorder %s422_s30, %s613_s0 }
   0x6   :  { %p428_p2 = pnand %p426_p1, %p423_p0 }
   0x8   :  { %431 = shalt.err (!%p428_p2)
}
   0x9   :  { %s432_s12 = scalar_lea.vmem %s21_s25, 128  ;;  %p437_p4 = scmp.lt.s32.totalorder %s21_s25, %s21_s25 }
   0xa   :  { %p433_p3 = scmp.ne.s32.totalorder %s21_s25, %s432_s12  ;;  %p438_p5 = scmp.lt.s32.totalorder %s432_s12, %s432_s12 }
   0xc   :  { %p439_p6 = por %p438_p5, %p437_p4 }
   0xe   :  { %p440_p7 = pnand %p439_p6, %p433_p3 }
  0x10   :  { %443 = shalt.err (!%p440_p7)
}
  0x11   :  { %23 = dma.hbm_to_vmem [thread:$0]  %s613_s0, 128, %s21_s25, [#allocation3]  }
  0x12   :  { %s444_s17 = scalar_lea.hbm %s614_s1, 256 }
  0x13   :  { %p445_p8 = scmp.ne.s32.totalorder %s614_s1, %s444_s17  ;;  %p448_p9 = scmp.lt.u32.totalorder %s444_s17, %s614_s1 }
  0x15   :  { %p450_p10 = pnand %p448_p9, %p445_p8 }
  0x17   :  { %453 = shalt.err (!%p450_p10)
}
  0x18   :  { %s454_s22 = scalar_lea.vmem %s525_s27, 256  ;;  %p459_p12 = scmp.lt.s32.totalorder %s525_s27, %s525_s27 }
  0x19   :  { %p455_p11 = scmp.ne.s32.totalorder %s525_s27, %s454_s22  ;;  %p460_p13 = scmp.lt.s32.totalorder %s454_s22, %s454_s22 }
  0x1b   :  { %p461_p0 = por %p460_p13, %p459_p12 }
  0x1d   :  { %p462_p1 = pnand %p461_p0, %p455_p11 }
  0x1f   :  { %465 = shalt.err (!%p462_p1)
}
  0x20   :  { %s472_s0 = smov 128   ;;  %s473_s23 = smov 8  }
  0x21   :  { %35 = dma.hbm_to_vmem [thread:$0]  %s614_s1, 256, %s525_s27, [#allocation5], %s472_s0, %s472_s0, %s473_s23  }
  0x22   :  { %466 = dma.done.wait [#allocation3], 128  }
  0x23   :  { %467 = vsyncadd [#allocation3], 4294967168 }
  0x24   :  { %468 = dma.done.wait [#allocation5], 256  }
  0x25   :  { %469 = vsyncadd [#allocation5], 4294967040  ;;  %v474_v0 = vmov 0.0|0.0   ;;  %vm475_vm0 = vmmov 0   ;;  %v476_v1 = vmov 0.0   ;;  %vm66_vm1 = vcmask 1040384  }
  0x26   :  { %379 = vmatprep.subr.bf16.mxu0 %v474_v0  ;;  %376 = vmatprep.mubr.msk.f32.mxu0 %vm475_vm0, %v476_v1  ;;  %v53_v2 = vld [vmem:[#allocation4] sm:$0xff]  ;;  %v54_v3 = vld [vmem:[#allocation4 + $0x8] sm:$0x1]  ;;  %vm477_vm2 = vmmov 1   ;;  %v52_v5 = vld [vmem:[#allocation2] sm:$0xff]  ;;  %vm62_vm4 = vcmask 72704  }
  0x27   :  { %vm381_vm3 = vmpackc.low %vm66_vm1, %vm477_vm2  ;;  %v380_v4 = vpack.c.bf16 %v54_v3, %v53_v2  ;;  %v362_v6 = vld [vmem:[%s615_s2] ss:$0 sm:$0xff]  ;;  %vm159_vm5 = vcmask 261120   ;;  %s478_s8 = smov 96   ;;  %s479_s2 = smov 64   ;;  %vm348_vm14 = vcmask 7168  }
  0x28   :  { %v365_v10 = vld [vmem:[%s616_s3] ss:$0 sm:$0xff]  ;;  %s480_s3 = smov 32   ;;  %s481_s11 = smov 1   ;;  %vm354_vm15 = vcmask 15368  }
  0x29   :  { %382 = vmatpush3.bf16.msk.msra.mxu0 %vm381_vm3, %v380_v4  ;;  %v366_v11 = vld [vmem:[%s617_s4] ss:$0 sm:$0xff]  ;;  %s483_s12 = smov 126   ;;  %s484_s13 = smov 125  }
  0x2a   :  { %v576_v19 = vld [vmem:[%s618_s5] ss:$0 sm:$0xff] }
  0x2b   :  { %v584_v39 = vld [vmem:[%s619_s6] ss:$0 sm:$0xff]  ;;  %s482_s6 = smov 127  }
  0x2c   :  { %377 = vmatmul.mubr.msk.f32.vlgmr.msra.gmra.mrb[0].mxu0 %vm62_vm4, %v52_v5 }
  0xff   :  { %v136_v7 = vpop.f32.mrb[0].mxu0 }
 0x100   :  { %v137_v8 = vadd.f32 %v362_v6, %v136_v7  ;;  %v378_v9 = vpop.f32.mrb[1].mxu0 }
 0x102   :  { %v140_v12 = vmax.f32 %v137_v8, 0.0 }
 0x104   :  { %v148_v13 = vmul.f32 %v365_v10, %v140_v12  ;;  %v565_v14 = vmul.f32 %v366_v11, %v140_v12 }
 0x106   :  { %213 = vrot.lane.b32.xlu1 %v565_v14, %s478_s8  ;;  %v160_v15 = vsel %vm159_vm5, %v148_v13, 0.0  ;;  %v170_v16 = vsel %vm159_vm5, %v565_v14, 0.0 }
 0x107   :  { %161 = vadd.xlane.f32.xlu0 %v160_v15 }
 0x10a   :  { %252 = vrot.lane.b32.xlu1 %v148_v13, %s479_s2 }
 0x11d   :  { %205 = vrot.lane.b32.xlu0 %v148_v13, %s478_s8 }
 0x12e   :  { %171 = vadd.xlane.f32.xlu1 %v170_v16 }
 0x13f   :  { %298 = vrot.lane.b32.xlu1 %v148_v13, %s480_s3 }
 0x178   :  { %v214_v17 = vpop.permute.xlu1 %213 }
 0x179   :  { %v216_v18 = vsel %vm159_vm5, %v214_v17, 0.0 }
 0x17a   :  { %217 = vadd.xlane.f32.xlu1 %v216_v18 }
 0x17c   :  { %v253_v36 = vpop.permute.xlu1 %252 }
 0x17d   :  { %v255_v46 = vsel %vm159_vm5, %v253_v36, 0.0 }
 0x194   :  { %v162_v20 = vpop.xlane.xlu0 %161 }
 0x195   :  { %v169_v21 = vadd.f32 %v576_v19, %v162_v20 }
 0x197   :  { %v183_v22 = vand.u32 2147483647, %v169_v21  ;;  %v180_v35 = vmax.f32 %v169_v21, 0.0  ;;  %vm181_vm7 = vcmp.ne.f32.partialorder %v169_v21, %v169_v21 }
 0x198   :  { %v206_v23 = vpop.permute.xlu0 %205 }
 0x199   :  { %v184_v24 = vsub.f32 0.0, %v183_v22  ;;  %v208_v25 = vsel %vm159_vm5, %v206_v23, 0.0 }
 0x19a   :  { %209 = vadd.xlane.f32.xlu0 %v208_v25 }
 0x19b   :  { %v185_v26 = vmul.f32 1.442695, %v184_v24 }
 0x19d   :  { %398 = vpow2.f32 %v185_v26 }
 0x1a7   :  { %v399_v27 = vpop.eup %398 }
 0x1a8   :  { %v187_v28 = vadd.f32 1.0, %v399_v27  ;;  %v190_v29 = vmul.f32 -0.5, %v399_v27  ;;  %v193_v31 = vand.u32 2147483647, %v399_v27 }
 0x1aa   :  { %400 = vlog2.f32 %v187_v28  ;;  %v191_v30 = vadd.f32 1.0, %v190_v29  ;;  %vm194_vm6 = vcmp.lt.f32.partialorder %v193_v31, 0.0004427343 }
 0x1ac   :  { %v192_v34 = vmul.f32 %v399_v27, %v191_v30 }
 0x1b0   :  { %259 = vrot.lane.b32.xlu0 %v565_v14, %s479_s2 }
 0x1b4   :  { %v401_v32 = vpop.eup %400 }
 0x1b5   :  { %v189_v33 = vmul.f32 0.6931472, %v401_v32 }
 0x1b7   :  { %v195_v37 = vsel %vm194_vm6, %v192_v34, %v189_v33 }
 0x1b8   :  { %v196_v38 = vadd.f32 %v195_v37, %v180_v35 }
 0x1ba   :  { %v197_v40 = vsel %vm181_vm7, %v169_v21, %v196_v38 }
 0x1bb   :  { %v172_v41 = vpop.xlane.xlu1 %171  ;;  %v586_v42 = vadd.f32 0.001, %v197_v40 }
 0x1bc   :  { %v179_v43 = vadd.f32 %v584_v39, %v172_v41 }
 0x1bd   :  { %v199_v44 = vmul.f32 %v586_v42, %v52_v5 }
 0x1bf   :  { %v200_v45 = vadd.f32 %v199_v44, %v179_v43  ;;  %v299_v47 = vpop.permute.xlu1 %298 }
 0x1c0   :  { %v301_v48 = vsel %vm159_vm5, %v299_v47, 0.0 }
 0x1c1   :  { %240 = vrot.lane.b32.xlu1 %v200_v45, %s481_s11 }
 0x1cf   :  { %256 = vadd.xlane.f32.xlu0 %v255_v46 }
 0x1e5   :  { %302 = vadd.xlane.f32.xlu1 %v301_v48 }
 0x207   :  { %v218_v2 = vpop.xlane.xlu1 %217 }
 0x208   :  { %v219_v7 = vadd.f32 %v584_v39, %v218_v2 }
 0x227   :  { %v210_v49 = vpop.xlane.xlu0 %209 }
 0x228   :  { %v211_v50 = vadd.f32 %v576_v19, %v210_v49 }
 0x22a   :  { %v223_v51 = vand.u32 2147483647, %v211_v50  ;;  %v220_v0 = vmax.f32 %v211_v50, 0.0  ;;  %vm221_vm9 = vcmp.ne.f32.partialorder %v211_v50, %v211_v50 }
 0x22b   :  { %v260_v52 = vpop.permute.xlu0 %259 }
 0x22c   :  { %v224_v53 = vsub.f32 0.0, %v223_v51  ;;  %v262_v54 = vsel %vm159_vm5, %v260_v52, 0.0 }
 0x22d   :  { %263 = vadd.xlane.f32.xlu0 %v262_v54 }
 0x22e   :  { %v225_v55 = vmul.f32 1.442695, %v224_v53 }
 0x230   :  { %402 = vpow2.f32 %v225_v55 }
 0x233   :  { %v241_v6 = vpop.permute.xlu1 %240 }
 0x23a   :  { %v403_v56 = vpop.eup %402 }
 0x23b   :  { %v227_v57 = vadd.f32 1.0, %v403_v56  ;;  %v230_v58 = vmul.f32 -0.5, %v403_v56  ;;  %v233_v60 = vand.u32 2147483647, %v403_v56 }
 0x23d   :  { %404 = vlog2.f32 %v227_v57  ;;  %v231_v59 = vadd.f32 1.0, %v230_v58  ;;  %vm234_vm8 = vcmp.lt.f32.partialorder %v233_v60, 0.0004427343 }
 0x23f   :  { %v232_v63 = vmul.f32 %v403_v56, %v231_v59 }
 0x243   :  { %305 = vrot.lane.b32.xlu0 %v565_v14, %s480_s3 }
 0x247   :  { %v405_v61 = vpop.eup %404 }
 0x248   :  { %v229_v62 = vmul.f32 0.6931472, %v405_v61 }
 0x24a   :  { %v235_v1 = vsel %vm234_vm8, %v232_v63, %v229_v62 }
 0x24b   :  { %v236_v3 = vadd.f32 %v235_v1, %v220_v0 }
 0x24d   :  { %v237_v4 = vsel %vm221_vm9, %v211_v50, %v236_v3 }
 0x24e   :  { %v238_v5 = vadd.f32 0.001, %v237_v4 }
 0x250   :  { %v243_v8 = vmul.f32 %v241_v6, %v238_v5  ;;  %406 = vlog2.f32 %v238_v5 }
 0x252   :  { %v244_v9 = vadd.f32 %v243_v8, %v219_v7 }
 0x254   :  { %286 = vrot.lane.b32.xlu1 %v244_v9, %s481_s11 }
 0x25a   :  { %v407_v10 = vpop.eup %406 }
 0x25b   :  { %v246_v11 = vmul.f32 0.6931472, %v407_v10 }
 0x25c   :  { %v257_v12 = vpop.xlane.xlu0 %256 }
 0x25d   :  { %v258_v13 = vadd.f32 %v576_v19, %v257_v12  ;;  %248 = vrot.lane.b32.xlu0 %v246_v11, %s482_s6 }
 0x25f   :  { %v269_v14 = vand.u32 2147483647, %v258_v13  ;;  %v266_v27 = vmax.f32 %v258_v13, 0.0  ;;  %vm267_vm11 = vcmp.ne.f32.partialorder %v258_v13, %v258_v13 }
 0x261   :  { %v270_v15 = vsub.f32 0.0, %v269_v14 }
 0x263   :  { %v271_v16 = vmul.f32 1.442695, %v270_v15 }
 0x265   :  { %408 = vpow2.f32 %v271_v16 }
 0x26f   :  { %v409_v17 = vpop.eup %408 }
 0x270   :  { %v273_v18 = vadd.f32 1.0, %v409_v17  ;;  %v276_v20 = vmul.f32 -0.5, %v409_v17  ;;  %v279_v22 = vand.u32 2147483647, %v409_v17 }
 0x272   :  { %410 = vlog2.f32 %v273_v18  ;;  %v277_v21 = vadd.f32 1.0, %v276_v20  ;;  %v303_v26 = vpop.xlane.xlu1 %302  ;;  %vm280_vm10 = vcmp.lt.f32.partialorder %v279_v22, 0.0004427343 }
 0x273   :  { %v304_v30 = vadd.f32 %v576_v19, %v303_v26 }
 0x274   :  { %v278_v25 = vmul.f32 %v409_v17, %v277_v21 }
 0x275   :  { %v315_v33 = vand.u32 2147483647, %v304_v30  ;;  %v312_v48 = vmax.f32 %v304_v30, 0.0  ;;  %vm313_vm13 = vcmp.ne.f32.partialorder %v304_v30, %v304_v30 }
 0x277   :  { %v316_v34 = vsub.f32 0.0, %v315_v33 }
 0x279   :  { %v317_v35 = vmul.f32 1.442695, %v316_v34 }
 0x27c   :  { %v411_v23 = vpop.eup %410 }
 0x27d   :  { %v275_v24 = vmul.f32 0.6931472, %v411_v23 }
 0x27f   :  { %v281_v28 = vsel %vm280_vm10, %v278_v25, %v275_v24 }
 0x280   :  { %v282_v29 = vadd.f32 %v281_v28, %v266_v27 }
 0x282   :  { %v283_v31 = vsel %vm267_vm11, %v258_v13, %v282_v29 }
 0x283   :  { %v284_v32 = vadd.f32 0.001, %v283_v31 }
 0x285   :  { %412 = vlog2.f32 %v284_v32 }
 0x286   :  { %414 = vpow2.f32 %v317_v35 }
 0x28f   :  { %v413_v36 = vpop.eup %412 }
 0x290   :  { %v292_v37 = vmul.f32 0.6931472, %v413_v36  ;;  %v415_v38 = vpop.eup %414 }
 0x291   :  { %v319_v40 = vadd.f32 1.0, %v415_v38  ;;  %v322_v41 = vmul.f32 -0.5, %v415_v38  ;;  %v325_v45 = vand.u32 2147483647, %v415_v38 }
 0x292   :  { %294 = vrot.lane.b32.xlu0 %v292_v37, %s483_s12 }
 0x293   :  { %416 = vlog2.f32 %v319_v40  ;;  %v323_v44 = vadd.f32 1.0, %v322_v41  ;;  %vm326_vm12 = vcmp.lt.f32.partialorder %v325_v45, 0.0004427343 }
 0x295   :  { %v324_v46 = vmul.f32 %v415_v38, %v323_v44 }
 0x29d   :  { %v417_v43 = vpop.eup %416 }
 0x29e   :  { %v321_v19 = vmul.f32 0.6931472, %v417_v43 }
 0x2a0   :  { %v327_v47 = vsel %vm326_vm12, %v324_v46, %v321_v19 }
 0x2a1   :  { %v328_v49 = vadd.f32 %v327_v47, %v312_v48 }
 0x2a3   :  { %v329_v50 = vsel %vm313_vm13, %v304_v30, %v328_v49 }
 0x2a4   :  { %v330_v52 = vadd.f32 0.001, %v329_v50 }
 0x2a6   :  { %418 = vlog2.f32 %v330_v52 }
 0x2a7   :  { %420 = vlog2.f32 %v586_v42 }
 0x2b0   :  { %v419_v59 = vpop.eup %418 }
 0x2b1   :  { %v338_v60 = vmul.f32 0.6931472, %v419_v59  ;;  %v421_v63 = vpop.eup %420 }
 0x2b2   :  { %v202_v2 = vmul.f32 0.6931472, %v421_v63 }
 0x2ba   :  { %v264_v51 = vpop.xlane.xlu0 %263 }
 0x2bb   :  { %v265_v56 = vadd.f32 %v584_v39, %v264_v51 }
 0x2be   :  { %v306_v53 = vpop.permute.xlu0 %305 }
 0x2bf   :  { %v308_v54 = vsel %vm159_vm5, %v306_v53, 0.0 }
 0x2c0   :  { %309 = vadd.xlane.f32.xlu1 %v308_v54 }
 0x2c6   :  { %v287_v55 = vpop.permute.xlu1 %286 }
 0x2c7   :  { %v289_v57 = vmul.f32 %v287_v55, %v284_v32 }
 0x2c9   :  { %v290_v58 = vadd.f32 %v289_v57, %v265_v56 }
 0x2cb   :  { %332 = vrot.lane.b32.xlu0 %v290_v58, %s481_s11 }
 0x2cf   :  { %340 = vrot.lane.b32.xlu0 %v338_v60, %s484_s13  ;;  %v249_v61 = vpop.permute.xlu0 %248 }
 0x2d0   :  { %v251_v5 = vadd.f32 %v249_v61, %v202_v2 }
 0x304   :  { %v295_v62 = vpop.permute.xlu0 %294 }
 0x305   :  { %v297_v8 = vadd.f32 %v295_v62, %v251_v5 }
 0x33d   :  { %v333_v0 = vpop.permute.xlu0 %332 }
 0x33e   :  { %v335_v3 = vmul.f32 %v333_v0, %v330_v52 }
 0x341   :  { %v341_v7 = vpop.permute.xlu0 %340 }
 0x342   :  { %v343_v9 = vadd.f32 %v341_v7, %v297_v8 }
 0x34d   :  { %v310_v1 = vpop.xlane.xlu1 %309 }
 0x34e   :  { %v311_v4 = vadd.f32 %v584_v39, %v310_v1 }
 0x350   :  { %v336_v6 = vadd.f32 %v335_v3, %v311_v4 }
 0x352   :  { %345 = vrot.lane.b32.xlu0 %v336_v6, %s484_s13 }
 0x356   :  { %351 = vrot.lane.b32.xlu0 %v343_v9, %s481_s11 }
 0x3c4   :  { %v346_v10 = vpop.permute.xlu0 %345 }
 0x3c5   :  { %349 = vst.msk [vmem:[%s620_s7] sm:$0xff] %vm348_vm14, %v346_v10 }
 0x3c8   :  { %v352_v42 = vpop.permute.xlu0 %351 }
 0x3c9   :  { %355 = vst.msk [vmem:[%s620_s7] sm:$0xff] %vm354_vm15, %v352_v42 }
 0x3ca   :  { %360 = vsyncpa [#allocation3], 1 }
 0x3cb   :  { %361 = vsyncpa [#allocation5], 1 }

</bundles_post_ra>
